<compile_context>
chip_gen: v7x
topology: tpu7x:2x2x1
jax: 0.10.0
libtpu: 0.0.40
codegen_flags: <defaults>
</compile_context>

<pallas_src>
import jax
import jax.numpy as jnp
from jax.experimental import pallas as pl
from jax.experimental.pallas import tpu as pltpu

HIDDEN = 13          # logical hidden size of the torch module
HIDDEN_PAD = 128     # padded hidden size (one full lane tile)


def _round_up(x: int, m: int) -> int:
    return ((x + m - 1) // m) * m


def _round_down(x: int, m: int) -> int:
    return (x // m) * m


def _vmem_capacity_bytes() -> int:
    """Per-core VMEM capacity; conservative fallback if the query is unavailable."""
    try:
        info = pltpu.get_tpu_info()
        cap = getattr(info, "vmem_capacity_bytes", None)
        if cap:
            return int(cap)
    except Exception:
        pass
    return 64 << 20  # v7x per-TC size; safe lower bound for v5e/v6e too


def mlp_kernel(x_ref, w1_ref, b1_ref, w2_ref, b2_ref, o_ref):
    # h = x @ W1 + b1                                   (tb, 128)
    h = jnp.dot(x_ref[...], w1_ref[...], preferred_element_type=jnp.float32)
    h = h + b1_ref[...]
    # LeakyReLU(0.01): max(h, 0.01*h) == where(h>0, h, 0.01*h) for all finite h
    h = jnp.maximum(h, 0.01 * h)
    # y = h @ W2 + b2                                   (tb, d_out)  -- no output padding
    y = jnp.dot(h, w2_ref[...], preferred_element_type=jnp.float32)
    o_ref[...] = (y + b2_ref[...]).astype(o_ref.dtype)


def mlp_forward(x, w1, b1, w2, b2, *, max_block_rows=None):
    """x: (B, d_in) f32; w1: (d_in, 13); b1: (1, 13); w2: (13, d_out); b2: (1, d_out)."""
    B, d_in = x.shape
    hidden, d_out = w2.shape
    assert w1.shape == (d_in, hidden)
    assert b1.shape == (1, hidden) and b2.shape == (1, d_out)

    # --- zero-pad hidden dim to a lane-dense 128 (exactness preserved) -------
    w1p = jnp.zeros((d_in, HIDDEN_PAD), jnp.float32).at[:, :hidden].set(w1)
    b1p = jnp.zeros((1, HIDDEN_PAD), jnp.float32).at[:, :hidden].set(b1)
    w2p = jnp.zeros((HIDDEN_PAD, d_out), jnp.float32).at[:hidden, :].set(w2)
    b2p = b2.astype(jnp.float32)

    # --- batch tile from an explicit VMEM budget ------------------------------
    vmem_cap = _vmem_capacity_bytes()
    budget = min(vmem_cap // 2, 40 << 20)          # ~40 MiB on v5e/v6e, ~32 MiB on v7x
    vmem_limit = max(min(vmem_cap * 3 // 4, 96 << 20), 32 << 20)

    # Double-buffered x/out tiles + resident (double-buffered) weights + hidden temp.
    weight_bytes = 2 * 4 * (d_in * HIDDEN_PAD + HIDDEN_PAD + HIDDEN_PAD * d_out + d_out)
    per_row_bytes = 4 * (2 * d_in + 2 * d_out + 2 * HIDDEN_PAD)
    tb = _round_down(max(budget - weight_bytes, 0) // per_row_bytes, 8)
    tb = max(tb, 8)
    # >= 4 grid blocks when the batch allows it (>=2 per v7x core, DMA/compute overlap)
    tb = min(tb, max(_round_up(pl.cdiv(B, 4), 8), 8))
    tb = min(tb, _round_up(B, 8))
    if max_block_rows is not None:
        tb = max(8, min(tb, _round_down(max(max_block_rows, 8), 8)))

    grid = (pl.cdiv(B, tb),)   # ragged last block handled by Pallas; no jnp.pad copy

    flops = 2 * B * (d_in * HIDDEN_PAD + HIDDEN_PAD * d_out)
    bytes_accessed = 4 * (B * d_in + B * d_out
                          + d_in * HIDDEN_PAD + HIDDEN_PAD
                          + HIDDEN_PAD * d_out + d_out)

    out = pl.pallas_call(
        mlp_kernel,
        out_shape=jax.ShapeDtypeStruct((B, d_out), jnp.float32),
        grid_spec=pltpu.PrefetchScalarGridSpec(
            num_scalar_prefetch=0,
            grid=grid,
            in_specs=[
                pl.BlockSpec((tb, d_in), lambda i: (i, 0)),             # x tile (pipelined)
                pl.BlockSpec((d_in, HIDDEN_PAD), lambda i: (0, 0)),     # W1 (resident)
                pl.BlockSpec((1, HIDDEN_PAD), lambda i: (0, 0)),        # b1 (resident)
                pl.BlockSpec((HIDDEN_PAD, d_out), lambda i: (0, 0)),    # W2 (resident)
                pl.BlockSpec((1, d_out), lambda i: (0, 0)),             # b2 (resident)
            ],
            out_specs=pl.BlockSpec((tb, d_out), lambda i: (i, 0)),      # unpadded output
        ),
        compiler_params=pltpu.CompilerParams(
            dimension_semantics=("parallel",),
            vmem_limit_bytes=vmem_limit,
        ),
        cost_estimate=pl.CostEstimate(
            flops=flops, transcendentals=0, bytes_accessed=bytes_accessed),
    )(x.astype(jnp.float32), w1p, b1p, w2p, b2p)

    return out


def init_params(key, input_size, output_size, hidden=HIDDEN):
    # Deterministic init mirroring torch.nn.Linear default: U(-1/sqrt(fan_in), 1/sqrt(fan_in)).
    k1, k2, k3, k4 = jax.random.split(key, 4)
    bound1 = 1.0 / (input_size ** 0.5)
    bound2 = 1.0 / (hidden ** 0.5)
    w1 = jax.random.uniform(k1, (input_size, hidden), jnp.float32, -bound1, bound1)
    b1 = jax.random.uniform(k2, (1, hidden), jnp.float32, -bound1, bound1)
    w2 = jax.random.uniform(k3, (hidden, output_size), jnp.float32, -bound2, bound2)
    b2 = jax.random.uniform(k4, (1, output_size), jnp.float32, -bound2, bound2)
    return w1, b1, w2, b2


if __name__ == "__main__":
    key = jax.random.PRNGKey(0)
    batch, input_size, output_size = 64, 32, 4

    kx, kp = jax.random.split(key)
    x = jax.random.normal(kx, (batch, input_size), jnp.float32)
    w1, b1, w2, b2 = init_params(kp, input_size, output_size)

    # With batch=64 the >=4-blocks rule picks tb=16 -> 4 grid steps, exercising
    # the pipelined multi-step path.
    out = mlp_forward(x, w1, b1, w2, b2)
    out = jax.block_until_ready(out)

    # Reference check in plain JAX (same math as the torch module).
    h_ref = x @ w1 + b1
    h_ref = jnp.where(h_ref > 0, h_ref, 0.01 * h_ref)
    y_ref = h_ref @ w2 + b2
    assert out.shape == (batch, output_size)
    assert jnp.allclose(out, y_ref, atol=1e-5, rtol=1e-5)

    print("KERNEL_OK")
</pallas_src>

<mosaic_0001>
module attributes {stable_mosaic.version = 11 : i64} {
  func.func @mlp_kernel(%arg0: i32, %arg1: memref<16x32xf32, #tpu.memory_space<vmem>>, %arg2: memref<32x128xf32, #tpu.memory_space<vmem>>, %arg3: memref<1x128xf32, #tpu.memory_space<vmem>>, %arg4: memref<128x4xf32, #tpu.memory_space<vmem>>, %arg5: memref<1x4xf32, #tpu.memory_space<vmem>>, %arg6: memref<16x4xf32, #tpu.memory_space<vmem>>) attributes {dimension_semantics = [#tpu.dimension_semantics<parallel>], iteration_bounds = array<i64: 4>, scalar_prefetch = 0 : i64, scratch_operands = 0 : i64, tpu.core_type = #tpu.core_type<tc>, window_params = [{transform_indices = @transform_0, window_bounds = array<i64: 16, 32>}, {pipeline_mode = #tpu.pipeline_mode<synchronous>, transform_indices = @transform_1, window_bounds = array<i64: 32, 128>}, {pipeline_mode = #tpu.pipeline_mode<synchronous>, transform_indices = @transform_2, window_bounds = array<i64: 1, 128>}, {pipeline_mode = #tpu.pipeline_mode<synchronous>, transform_indices = @transform_3, window_bounds = array<i64: 128, 4>}, {pipeline_mode = #tpu.pipeline_mode<synchronous>, transform_indices = @transform_4, window_bounds = array<i64: 1, 4>}, {transform_indices = @transform_5, window_bounds = array<i64: 16, 4>}]} {
    %c0 = arith.constant 0 : index
    %c0_0 = arith.constant 0 : index
    %0 = vector.load %arg1[%c0, %c0_0] : memref<16x32xf32, #tpu.memory_space<vmem>>, vector<16x32xf32>
    %c0_1 = arith.constant 0 : index
    %c0_2 = arith.constant 0 : index
    %1 = vector.load %arg2[%c0_1, %c0_2] : memref<32x128xf32, #tpu.memory_space<vmem>>, vector<32x128xf32>
    %cst = arith.constant dense<0.000000e+00> : vector<16x128xf32>
    %2 = tpu.matmul %0, %1, %cst {dimension_numbers = #tpu.dot_dimension_numbers<[1], [0], [0], [1], [0, 0, 1, 1], [], []>} : vector<16x32xf32>, vector<32x128xf32>, vector<16x128xf32> -> vector<16x128xf32>
    %c0_3 = arith.constant 0 : index
    %c0_4 = arith.constant 0 : index
    %3 = vector.load %arg3[%c0_3, %c0_4] : memref<1x128xf32, #tpu.memory_space<vmem>>, vector<1x128xf32>
    %4 = vector.broadcast %3 : vector<1x128xf32> to vector<16x128xf32>
    %5 = arith.addf %2, %4 : vector<16x128xf32>
    %cst_5 = arith.constant 0.00999999977 : f32
    %6 = vector.broadcast %cst_5 : f32 to vector<16x128xf32>
    %7 = arith.mulf %6, %5 : vector<16x128xf32>
    %8 = arith.maximumf %5, %7 : vector<16x128xf32>
    %c0_6 = arith.constant 0 : index
    %c0_7 = arith.constant 0 : index
    %9 = vector.load %arg4[%c0_6, %c0_7] : memref<128x4xf32, #tpu.memory_space<vmem>>, vector<128x4xf32>
    %cst_8 = arith.constant dense<0.000000e+00> : vector<16x4xf32>
    %10 = tpu.matmul %8, %9, %cst_8 {dimension_numbers = #tpu.dot_dimension_numbers<[1], [0], [0], [1], [0, 0, 1, 1], [], []>} : vector<16x128xf32>, vector<128x4xf32>, vector<16x4xf32> -> vector<16x4xf32>
    %c0_9 = arith.constant 0 : index
    %c0_10 = arith.constant 0 : index
    %11 = vector.load %arg5[%c0_9, %c0_10] : memref<1x4xf32, #tpu.memory_space<vmem>>, vector<1x4xf32>
    %12 = vector.broadcast %11 : vector<1x4xf32> to vector<16x4xf32>
    %13 = arith.addf %10, %12 : vector<16x4xf32>
    %c0_11 = arith.constant 0 : index
    %c0_12 = arith.constant 0 : index
    %14 = vector.load %arg6[%c0_11, %c0_12] : memref<16x4xf32, #tpu.memory_space<vmem>>, vector<16x4xf32>
    tpu.vector_store %arg6[%c0_11, %c0_12], %13 {strides = array<i32>} : memref<16x4xf32, #tpu.memory_space<vmem>>, vector<16x4xf32>,
    return
  }
  func.func @transform_0(%arg0: i32) -> (i32, i32) {
    %c0_i32 = arith.constant 0 : i32
    %c0_i32_0 = arith.constant 0 : i32
    return %arg0, %c0_i32 : i32, i32
  }
  func.func @transform_1(%arg0: i32) -> (i32, i32) {
    %c0_i32 = arith.constant 0 : i32
    %c0_i32_0 = arith.constant 0 : i32
    %c0_i32_1 = arith.constant 0 : i32
    return %c0_i32, %c0_i32_0 : i32, i32
  }
  func.func @transform_2(%arg0: i32) -> (i32, i32) {
    %c0_i32 = arith.constant 0 : i32
    %c0_i32_0 = arith.constant 0 : i32
    %c0_i32_1 = arith.constant 0 : i32
    return %c0_i32, %c0_i32_0 : i32, i32
  }
  func.func @transform_3(%arg0: i32) -> (i32, i32) {
    %c0_i32 = arith.constant 0 : i32
    %c0_i32_0 = arith.constant 0 : i32
    %c0_i32_1 = arith.constant 0 : i32
    return %c0_i32, %c0_i32_0 : i32, i32
  }
  func.func @transform_4(%arg0: i32) -> (i32, i32) {
    %c0_i32 = arith.constant 0 : i32
    %c0_i32_0 = arith.constant 0 : i32
    %c0_i32_1 = arith.constant 0 : i32
    return %c0_i32, %c0_i32_0 : i32, i32
  }
  func.func @transform_5(%arg0: i32) -> (i32, i32) {
    %c0_i32 = arith.constant 0 : i32
    %c0_i32_0 = arith.constant 0 : i32
    return %arg0, %c0_i32 : i32, i32
  }
}

</mosaic_0001>

<bundles_post_ra>
// kernel: tpu_custom_call.1
= control target key start
LH: loop header
LB: loop body
LE: loop exit
PB: predicated region body
PF: predicated region fallthrough
CT: control target
= control target key end

     0   :  { %s655_s18 = smov 0   ;;  %s745_s0 = inlined_call_operand.vmem [shape: f32[64,32], index: 0, kind: input, shape index: {}]   ;;  %s746_s1 = inlined_call_operand.vmem [shape: f32[32,128], index: 1, kind: input, shape index: {}]   ;;  %s747_s2 = inlined_call_operand.vmem [shape: f32[1,128], index: 2, kind: input, shape index: {}]   ;;  %s748_s3 = inlined_call_operand.vmem [shape: f32[128,4], index: 3, kind: input, shape index: {}]   ;;  %s749_s4 = inlined_call_operand.vmem [shape: f32[1,4], index: 4, kind: input, shape index: {}]   ;;  %s750_s5 = inlined_call_operand.vmem [shape: f32[64,4], index: 5, kind: output, shape index: {}]  }
   0x1 LB: > { %s484_s19 = sadd.s32 4294967295, %s623_s18   ;;  %p488_p0 = scmp.ge.s32.totalorder %s623_s18, 1  ;;  %s623_s18 = sphi %s655_s18, %s15_s18  }
   0x2   : > { %p188_p1 = scmp.lt.s32.totalorder %s623_s18, 5 }
   0x4   : > { %p189_p2 = pnand %p488_p0, %p188_p1 }
   0x5   : > { %v230_v0 = vld [vmem:[%s746_s1] sm:$0xff] (!%p189_p2)  ;;  %v231_v1 = vld [vmem:[%s746_s1 + $0x8] sm:$0xff] (!%p189_p2)  ;;  %v232_v2 = vld [vmem:[%s746_s1 + $0x10] sm:$0xff] (!%p189_p2)  ;;  %s489_s26 = sshll.u32 (!%p189_p2), %s484_s19, 1  ;;  %vm241_vm0 = vcmask (!%p189_p2), 261120   ;;  %vm425_vm1 = vcmask (!%p189_p2), 31744  }
   0x6   : > { %192 = sbr.rel (%p189_p2) target bundleno = 454 (0x1c6), region = 40  ;;  %v569_v3 = vpack.c.bf16 (!%p189_p2), %v231_v1, %v230_v0  ;;  %v233_v4 = vld [vmem:[%s746_s1 + $0x18] sm:$0xff] (!%p189_p2)  ;;  %p217_p3 = scmp.lt.s32.totalorder (!%p189_p2), %s489_s26, 7  ;;  %v327_v5 = vld [vmem:[%s748_s3] sm:$0xff] (!%p189_p2)  ;;  %v328_v6 = vld [vmem:[%s748_s3 + $0x8] sm:$0xff] (!%p189_p2) }
   0x7   : > { %v573_v7 = vpack.c.bf16 (!%p189_p2), %v233_v4, %v232_v2  ;;  %v577_v8 = vpack.c.bf16 (!%p189_p2), %v328_v6, %v327_v5  ;;  %v329_v9 = vld [vmem:[%s748_s3 + $0x10] sm:$0xff] (!%p189_p2)  ;;  %v330_v10 = vld [vmem:[%s748_s3 + $0x18] sm:$0xff] (!%p189_p2)  ;;  %v331_v12 = vld [vmem:[%s748_s3 + $0x20] sm:$0xff] (!%p189_p2) }
   0x8   : > { %570 = vmatprep.subr.bf16.mxu0 (!%p189_p2), %v569_v3  ;;  %v581_v11 = vpack.c.bf16 (!%p189_p2), %v330_v10, %v329_v9  ;;  %v332_v13 = vld [vmem:[%s748_s3 + $0x28] sm:$0xff] (!%p189_p2)  ;;  %v333_v16 = vld [vmem:[%s748_s3 + $0x30] sm:$0xff] (!%p189_p2)  ;;  %v334_v17 = vld [vmem:[%s748_s3 + $0x38] sm:$0xff] (!%p189_p2) }
   0x9   : > { %572 = vmatpush3.bf16.msra.mxu0 (!%p189_p2), %v569_v3  ;;  %578 = vmatprep.subr.bf16.mxu1 (!%p189_p2), %v577_v8  ;;  %v585_v14 = vpack.c.bf16 (!%p189_p2), %v332_v13, %v331_v12  ;;  %v589_v19 = vpack.c.bf16 (!%p189_p2), %v334_v17, %v333_v16  ;;  %v335_v20 = vld [vmem:[%s748_s3 + $0x40] sm:$0xff] (!%p189_p2)  ;;  %v336_v21 = vld [vmem:[%s748_s3 + $0x48] sm:$0xff] (!%p189_p2)  ;;  %v337_v23 = vld [vmem:[%s748_s3 + $0x50] sm:$0xff] (!%p189_p2) }
   0xa   : > { %574 = vmatprep.subr.bf16.mxu0 (!%p189_p2), %v573_v7  ;;  %580 = vmatpush3.bf16.msra.mxu1 (!%p189_p2), %v577_v8  ;;  %v593_v22 = vpack.c.bf16 (!%p189_p2), %v336_v21, %v335_v20  ;;  %v338_v24 = vld [vmem:[%s748_s3 + $0x58] sm:$0xff] (!%p189_p2)  ;;  %v339_v26 = vld [vmem:[%s748_s3 + $0x60] sm:$0xff] (!%p189_p2)  ;;  %v340_v27 = vld [vmem:[%s748_s3 + $0x68] sm:$0xff] (!%p189_p2) }
   0xb   : > { %582 = vmatprep.subr.bf16.mxu1 (!%p189_p2), %v581_v11  ;;  %v597_v25 = vpack.c.bf16 (!%p189_p2), %v338_v24, %v337_v23  ;;  %v601_v28 = vpack.c.bf16 (!%p189_p2), %v340_v27, %v339_v26  ;;  %v341_v29 = vld [vmem:[%s748_s3 + $0x70] sm:$0xff] (!%p189_p2)  ;;  %v342_v30 = vld [vmem:[%s748_s3 + $0x78] sm:$0xff] (!%p189_p2)  ;;  %v493_v32 = vld [vmem:[%s747_s2] ss:$0 sm:$0xff] (!%p189_p2) }
   0xc   : > { %v605_v31 = vpack.c.bf16 (!%p189_p2), %v342_v30, %v341_v29  ;;  %v496_v41 = vld [vmem:[%s749_s4] ss:$0 sm:$0xff] (!%p189_p2) }
   0xd   : > { %s752_s26 = smov (!%p217_p3, %s489_s26), 7  ;;  %576 = vmatpush3.bf16.msra.mxu0 %v573_v7 }
   0xe   : > { %s490_s16 = sshll.u32 %s752_s26, 3  ;;  %584 = vmatpush3.bf16.msra.mxu1 %v581_v11 }
   0xf   : > { %s220_s20 = scalar_lea.vmem %s745_s0, %s490_s16  ;;  %586 = vmatprep.subr.bf16.mxu1 %v585_v14  ;;  %s226_s25 = scalar_lea.vmem %s750_s5, %s490_s16 }
  0x10   : > { %v228_v15 = vld [vmem:[%s220_s20] sm:$0xff]  ;;  %v229_v18 = vld [vmem:[%s220_s20 + $0x8] sm:$0xff] }
  0x11   : > { %531 = vmatprep.mubr.msk.f32.mxu0 %vm241_vm0, %v228_v15 }
  0x12   : > { %532 = vmatmul.mubr.msk.f32.vlgmr.msra.gmra.mrb[0].mxu0 %vm241_vm0, %v229_v18  ;;  %588 = vmatpush3.bf16.msra.mxu1 %v585_v14 }
  0x13   : > { %590 = vmatprep.subr.bf16.mxu1 %v589_v19 }
  0x16   : > { %592 = vmatpush3.bf16.msra.mxu1 %v589_v19 }
  0x17   : > { %594 = vmatprep.subr.bf16.mxu1 %v593_v22 }
  0x1a   : > { %596 = vmatpush3.bf16.msra.mxu1 %v593_v22 }
  0x1b   : > { %598 = vmatprep.subr.bf16.mxu1 %v597_v25 }
  0x1e   : > { %600 = vmatpush3.bf16.msra.mxu1 %v597_v25 }
  0x1f   : > { %602 = vmatprep.subr.bf16.mxu1 %v601_v28 }
  0x22   : > { %604 = vmatpush3.bf16.msra.mxu1 %v601_v28 }
  0x23   : > { %606 = vmatprep.subr.bf16.mxu1 %v605_v31 }
  0x26   : > { %608 = vmatpush3.bf16.msra.mxu1 %v605_v31 }
  0xe5   : > { %v533_v33 = vpop.f32.mrb[0].mxu0 }
  0xe6   : > { %v320_v34 = vadd.f32 %v533_v33, %v493_v32  ;;  %v314_v35 = vpop.f32.mrb[1].mxu0 }
  0xe7   : > { %v315_v36 = vadd.f32 %v493_v32, %v314_v35 }
  0xe8   : > { %v324_v37 = vmul.f32 0.01, %v320_v34 }
  0xe9   : > { %v323_v38 = vmul.f32 0.01, %v315_v36 }
  0xea   : > { %v326_v40 = vmax.f32 %v320_v34, %v324_v37 }
  0xeb   : > { %v325_v39 = vmax.f32 %v315_v36, %v323_v38 }
  0xed   : > { %566 = vmatprep.mubr.f32.mxu1 %v325_v39 }
  0xee   : > { %567 = vmatmul.mubr.f32.vlgmr.msra.gmra.mrb[0].mxu1 %v326_v40 }
 0x1c1   : > { %v568_v42 = vpop.f32.mrb[0].mxu1 }
 0x1c2   : > { %v416_v43 = vpop.f32.mrb[1].mxu1  ;;  %v422_v45 = vadd.f32 %v568_v42, %v496_v41 }
 0x1c3   : > { %v417_v44 = vadd.f32 %v496_v41, %v416_v43 }
 0x1c4   : > { %427 = vst.msk [vmem:[%s226_s25 + $0x8] sm:$0xff] %vm425_vm1, %v422_v45 }
 0x1c5   : > { %426 = vst.msk [vmem:[%s226_s25] sm:$0xff] %vm425_vm1, %v417_v44 }
 0x1c6 PF: > { %s15_s18 = sadd.s32 1, %s623_s18  }
 0x1c7   : > { %p12_p4 = scmp.ge.s32.totalorder %s15_s18, 6  }
 0x1c9   :  { %14 = sbr.rel (!%p12_p4) target bundleno = 1 (0x1), region = 70 }

</bundles_post_ra>
